<compile_context>
chip_gen: v5e
topology: v5e:2x2
jax: 0.10.0
libtpu: 0.0.40
codegen_flags: <defaults>
</compile_context>

<pallas_src>
import functools
import math

import jax
import jax.numpy as jnp
from jax import lax
from jax.experimental import pallas as pl
from jax.experimental.pallas import tpu as pltpu

COMPUTE_DTYPE = jnp.bfloat16      # MXU operand dtype; accumulation stays f32


def _vmem_limit_bytes():
    """Generation-aware scoped-VMEM budget (~3/4 of physical, capped)."""
    try:
        info = pltpu.get_tpu_info()
        cap = getattr(info, "vmem_capacity_bytes", None)
        if cap:
            return int(min(cap * 3 // 4, 100 * 1024 * 1024))
    except Exception:
        pass
    return 48 * 1024 * 1024       # safe default for v7x (64 MiB physical / TC)


VMEM_LIMIT = _vmem_limit_bytes()
_BIG_VMEM = VMEM_LIMIT >= 64 * 1024 * 1024
_GEMM_MT = 512 if _BIG_VMEM else 256    # row-tile target for linears
_GEMM_NT = 512 if _BIG_VMEM else 256    # col-tile target for linears
_GEMM_KT = 512                          # contraction-tile target
# Weights up to this size stay fully resident in VMEM (constant index_map).
_RESIDENT_W_BYTES = min(8 * 1024 * 1024, VMEM_LIMIT // 4)


def _pick_tile(dim, target, quantum):
    """Largest tile <= target that divides `dim` and is a multiple of `quantum`.

    Falls back to the full dim when the dim is small or not quantum-aligned
    (full-dim blocks always satisfy the (8,128) BlockSpec constraint).
    """
    if dim <= target or dim % quantum != 0:
        return dim
    t = (min(target, dim) // quantum) * quantum
    while t > quantum and dim % t != 0:
        t -= quantum
    return t if (t > 0 and dim % t == 0) else dim


# ----------------------------------------------------------------------------
# Kernel 1: dense projection  y = x @ W + b
#   - weight-resident variant (constant index_map) when W fits in VMEM
#   - M/N/K-tiled variant with f32 accumulator otherwise (needed for the
#     (D, 3D) QKV weight at large d_model, keeps VMEM flat on v7x)
# ----------------------------------------------------------------------------
def _linear_resident_kernel(x_ref, w_ref, b_ref, o_ref):
    o_ref[...] = (jnp.dot(x_ref[...], w_ref[...],
                          preferred_element_type=jnp.float32)
                  + b_ref[...]).astype(o_ref.dtype)


def _linear_tiled_kernel(x_ref, w_ref, b_ref, o_ref, acc_ref):
    kk = pl.program_id(2)

    @pl.when(kk == 0)
    def _init():
        acc_ref[...] = jnp.zeros_like(acc_ref)

    acc_ref[...] += jnp.dot(x_ref[...], w_ref[...],
                            preferred_element_type=jnp.float32)

    @pl.when(kk == pl.num_programs(2) - 1)
    def _fin():
        o_ref[...] = (acc_ref[...] + b_ref[...]).astype(o_ref.dtype)


def pallas_linear(x2d, w, b, out_dtype):
    R, Din = x2d.shape
    Dout = w.shape[1]
    w_bytes = Din * Dout * w.dtype.itemsize
    flops = 2 * R * Din * Dout
    bytes_accessed = ((R * Din + Din * Dout) * x2d.dtype.itemsize
                      + R * Dout * jnp.dtype(out_dtype).itemsize)

    if w_bytes <= _RESIDENT_W_BYTES:
        # Whole weight resident in VMEM; tile only rows. W is DMA'd once.
        tm = _pick_tile(R, _GEMM_MT, 8)
        return pl.pallas_call(
            _linear_resident_kernel,
            out_shape=jax.ShapeDtypeStruct((R, Dout), out_dtype),
            grid_spec=pltpu.PrefetchScalarGridSpec(
                num_scalar_prefetch=0,
                grid=(R // tm,),
                in_specs=[
                    pl.BlockSpec((tm, Din), lambda i: (i, 0)),
                    pl.BlockSpec((Din, Dout), lambda i: (0, 0)),   # resident
                    pl.BlockSpec((1, Dout), lambda i: (0, 0)),
                ],
                out_specs=pl.BlockSpec((tm, Dout), lambda i: (i, 0)),
            ),
            compiler_params=pltpu.CompilerParams(
                dimension_semantics=("parallel",),
                vmem_limit_bytes=VMEM_LIMIT,
            ),
            cost_estimate=pl.CostEstimate(flops=flops, transcendentals=0,
                                          bytes_accessed=bytes_accessed),
        )(x2d, w, b)

    tm = _pick_tile(R, _GEMM_MT, 8)
    tn = _pick_tile(Dout, _GEMM_NT, 128)
    tk = _pick_tile(Din, _GEMM_KT, 128)
    grid = (R // tm, Dout // tn, Din // tk)
    return pl.pallas_call(
        _linear_tiled_kernel,
        out_shape=jax.ShapeDtypeStruct((R, Dout), out_dtype),
        grid_spec=pltpu.PrefetchScalarGridSpec(
            num_scalar_prefetch=0,
            grid=grid,
            in_specs=[
                pl.BlockSpec((tm, tk), lambda i, j, kk: (i, kk)),
                pl.BlockSpec((tk, tn), lambda i, j, kk: (kk, j)),
                pl.BlockSpec((1, tn), lambda i, j, kk: (0, j)),
            ],
            out_specs=pl.BlockSpec((tm, tn), lambda i, j, kk: (i, j)),
            scratch_shapes=[pltpu.VMEM((tm, tn), jnp.float32)],
        ),
        compiler_params=pltpu.CompilerParams(
            dimension_semantics=("parallel", "parallel", "arbitrary"),
            vmem_limit_bytes=VMEM_LIMIT,
        ),
        cost_estimate=pl.CostEstimate(flops=flops, transcendentals=0,
                                      bytes_accessed=bytes_accessed),
    )(x2d, w, b)


# ----------------------------------------------------------------------------
# Kernel 2: flash-style attention, head-major (B, H, S, d_k), head = grid axis.
# Online softmax; KV streamed on the trailing "arbitrary" grid axis.
# Mask enters as a (1, tk) additive f32 bias row per KV tile (or not at all).
# q arrives pre-scaled by 1/sqrt(d_k).
# ----------------------------------------------------------------------------
def _flash_attn_kernel(*refs, has_mask):
    if has_mask:
        q_ref, k_ref, v_ref, bias_ref, o_ref, m_ref, l_ref, acc_ref = refs
    else:
        q_ref, k_ref, v_ref, o_ref, m_ref, l_ref, acc_ref = refs

    ki = pl.program_id(3)

    @pl.when(ki == 0)
    def _init():
        m_ref[...] = jnp.full_like(m_ref, -jnp.inf)
        l_ref[...] = jnp.zeros_like(l_ref)
        acc_ref[...] = jnp.zeros_like(acc_ref)

    q = q_ref[0, 0]            # (tq, d_k) bf16, already scaled by 1/sqrt(d_k)
    k = k_ref[0, 0]            # (tk, d_k) bf16
    v = v_ref[0, 0]            # (tk, d_k) bf16

    s = lax.dot_general(q, k, (((1,), (1,)), ((), ())),
                        preferred_element_type=jnp.float32)      # (tq, tk)
    if has_mask:
        s = s + bias_ref[0]                                      # (1, tk) bias

    m_prev = m_ref[...]                                          # (tq, 1)
    m_new = jnp.maximum(m_prev, jnp.max(s, axis=-1, keepdims=True))
    alpha = jnp.exp(m_prev - m_new)
    p = jnp.exp(s - m_new)                                       # f32
    l_ref[...] = alpha * l_ref[...] + jnp.sum(p, axis=-1, keepdims=True)
    m_ref[...] = m_new
    pv = lax.dot_general(p.astype(v.dtype), v, (((1,), (0,)), ((), ())),
                         preferred_element_type=jnp.float32)     # (tq, d_k)
    acc_ref[...] = alpha * acc_ref[...] + pv

    @pl.when(ki == pl.num_programs(3) - 1)
    def _fin():
        # TODO(synk): training-time dropout on attention probs not implemented
        # (eval-mode identity).
        inv_l = pl.reciprocal(l_ref[...], approx=True)           # EUP slot
        o_ref[0, 0] = (acc_ref[...] * inv_l).astype(o_ref.dtype)


def pallas_flash_attention(q, k, v, bias_row=None):
    """q, k, v: (B, H, S, d_k) bf16 (q pre-scaled). bias_row: (B, 1, S) f32 or None."""
    B, H, S, d_k = q.shape
    tq = _pick_tile(S, 128, 8)
    tk = _pick_tile(S, 256, 128)
    grid = (B, H, S // tq, S // tk)
    has_mask = bias_row is not None
    kernel = functools.partial(_flash_attn_kernel, has_mask=has_mask)

    q_spec = pl.BlockSpec((1, 1, tq, d_k), lambda b, h, qi, ki: (b, h, qi, 0))
    kv_spec = pl.BlockSpec((1, 1, tk, d_k), lambda b, h, qi, ki: (b, h, ki, 0))
    o_spec = pl.BlockSpec((1, 1, tq, d_k), lambda b, h, qi, ki: (b, h, qi, 0))
    in_specs = [q_spec, kv_spec, kv_spec]
    args = [q, k, v]
    if has_mask:
        in_specs.append(
            pl.BlockSpec((1, 1, tk), lambda b, h, qi, ki: (b, 0, ki)))
        args.append(bias_row)

    bytes_accessed = 4 * B * H * S * d_k * q.dtype.itemsize
    if has_mask:
        bytes_accessed += B * S * 4
    return pl.pallas_call(
        kernel,
        out_shape=jax.ShapeDtypeStruct((B, H, S, d_k), q.dtype),
        grid_spec=pltpu.PrefetchScalarGridSpec(
            num_scalar_prefetch=0,
            grid=grid,
            in_specs=in_specs,
            out_specs=o_spec,
            scratch_shapes=[
                pltpu.VMEM((tq, 1), jnp.float32),      # running max
                pltpu.VMEM((tq, 1), jnp.float32),      # running sum
                pltpu.VMEM((tq, d_k), jnp.float32),    # accumulator
            ],
        ),
        compiler_params=pltpu.CompilerParams(
            dimension_semantics=("parallel", "parallel", "parallel",
                                 "arbitrary"),
            vmem_limit_bytes=VMEM_LIMIT,
        ),
        cost_estimate=pl.CostEstimate(
            flops=4 * B * H * S * S * d_k,
            transcendentals=B * H * S * S,
            bytes_accessed=bytes_accessed,
        ),
    )(*args)


# ----------------------------------------------------------------------------
# Kernel 3: LayerNorm  (matches spec: unbiased std, eps added to std)
# ----------------------------------------------------------------------------
def _layernorm_kernel(x_ref, g_ref, b_ref, o_ref, *, eps):
    x = x_ref[...].astype(jnp.float32)
    d = x.shape[-1]
    mean = jnp.mean(x, axis=-1, keepdims=True)
    xc = x - mean
    var = jnp.sum(xc * xc, axis=-1, keepdims=True) / (d - 1)   # unbiased std
    inv = pl.reciprocal(jnp.sqrt(var) + eps)                   # (tm, 1) column
    o_ref[...] = (g_ref[...] * (xc * inv) + b_ref[...]).astype(o_ref.dtype)


def pallas_layernorm(x2d, gamma, beta, eps=1e-6):
    R, D = x2d.shape
    tm = _pick_tile(R, 512 if _BIG_VMEM else 256, 8)
    return pl.pallas_call(
        functools.partial(_layernorm_kernel, eps=eps),
        out_shape=jax.ShapeDtypeStruct((R, D), jnp.float32),
        grid_spec=pltpu.PrefetchScalarGridSpec(
            num_scalar_prefetch=0,
            grid=(R // tm,),
            in_specs=[
                pl.BlockSpec((tm, D), lambda i: (i, 0)),
                pl.BlockSpec((1, D), lambda i: (0, 0)),
                pl.BlockSpec((1, D), lambda i: (0, 0)),
            ],
            out_specs=pl.BlockSpec((tm, D), lambda i: (i, 0)),
        ),
        compiler_params=pltpu.CompilerParams(
            dimension_semantics=("parallel",),
            vmem_limit_bytes=VMEM_LIMIT,
        ),
    )(x2d, gamma, beta)


# ----------------------------------------------------------------------------
# Parameters (xavier_uniform gain=0.1, zero bias; weights stored (Din, Dout)
# = torch weight.T, in bf16 for the MXU; biases / LN params in f32)
# ----------------------------------------------------------------------------
def init_encoder_params(key, n_layers, n_heads, d_model):
    limit = 0.1 * math.sqrt(6.0 / (d_model + d_model))
    layer_keys = jax.random.split(key, n_layers)
    layers = []
    for lk in layer_keys:
        kq, kk, kv, ko = jax.random.split(lk, 4)

        def uni(k):
            return jax.random.uniform(k, (d_model, d_model), jnp.float32,
                                      minval=-limit, maxval=limit)

        w_qkv = jnp.concatenate([uni(kq), uni(kk), uni(kv)], axis=1)
        layers.append(dict(
            w_qkv=w_qkv.astype(COMPUTE_DTYPE),
            b_qkv=jnp.zeros((1, 3 * d_model), jnp.float32),
            w_o=uni(ko).astype(COMPUTE_DTYPE),
            b_o=jnp.zeros((1, d_model), jnp.float32),
        ))
    return dict(
        h=n_heads, d_model=d_model, layers=layers,
        ln_gamma=jnp.ones((1, d_model), jnp.float32),
        ln_beta=jnp.zeros((1, d_model), jnp.float32),
    )


# ----------------------------------------------------------------------------
# Forward pass helpers (shared by kernel path and pure-JAX reference)
# ----------------------------------------------------------------------------
def _mask_to_bias_row(mask, B, S):
    """Key-padding mask -> additive (B, 1, S) f32 bias row ({0, -1e9}).

    Matches torch masked_fill(mask == 0, -1e9). Only O(B*S) bytes; never
    materializes a (B, S, S) bias.
    """
    if mask is None:
        return None
    m = jnp.asarray(mask)
    while m.ndim > 2:          # (B,1,S) / (B,1,1,S) -> (B,S)
        m = m[:, 0]
    # TODO(synk): general per-query (B, Sq, Sk) masks would need a full bias
    # block streamed per (qi, ki) tile; the encoder only uses key padding.
    m = jnp.broadcast_to(m.reshape(B, 1, S), (B, 1, S))
    return jnp.where(m == 0, -1e9, 0.0).astype(jnp.float32)


def _split_heads_scaled(qkv2d, B, S, H, d_k, scale):
    """(B*S, 3*D) -> head-major (B, H, S, d_k) q (pre-scaled), k, v."""
    qkv = qkv2d.reshape(B, S, 3, H, d_k)
    q = (qkv[:, :, 0].astype(jnp.float32) * scale).astype(COMPUTE_DTYPE)
    k = qkv[:, :, 1]
    v = qkv[:, :, 2]
    to_hm = lambda t: t.transpose(0, 2, 1, 3)      # (B, H, S, d_k)
    return to_hm(q), to_hm(k), to_hm(v)


def mha_self_attention_layer(lp, x, bias_row, num_heads):
    """One encoder layer: multi-head self-attention (eval mode)."""
    B, S, D = x.shape
    d_k = D // num_heads
    scale = 1.0 / math.sqrt(d_k)
    x2 = x.reshape(B * S, D).astype(COMPUTE_DTYPE)
    qkv = pallas_linear(x2, lp["w_qkv"], lp["b_qkv"], COMPUTE_DTYPE)
    q, k, v = _split_heads_scaled(qkv, B, S, num_heads, d_k, scale)
    attn = pallas_flash_attention(q, k, v, bias_row)     # (B, H, S, d_k)
    ctx = attn.transpose(0, 2, 1, 3).reshape(B * S, D)
    out = pallas_linear(ctx, lp["w_o"], lp["b_o"], COMPUTE_DTYPE)
    return out.reshape(B, S, D)


def encoder_forward(params, x, mask=None):
    """Encoder.forward: pass x (and mask) through each layer, then LayerNorm."""
    B, S, D = x.shape
    bias_row = _mask_to_bias_row(mask, B, S)
    # TODO(synk): the reference `layer` is abstract (injected at construction);
    # it is modeled here as multi-head self-attention — residual/FFN sublayers
    # and training-time dropout are not part of the provided spec.
    h = x
    for lp in params["layers"]:
        h = mha_self_attention_layer(lp, h, bias_row, params["h"])
    out = pallas_layernorm(h.reshape(B * S, D), params["ln_gamma"],
                           params["ln_beta"], eps=1e-6)
    return out.reshape(B, S, D)


# ----------------------------------------------------------------------------
# Pure-JAX reference (mirrors the bf16 operand casts so tolerances stay tight)
# ----------------------------------------------------------------------------
def reference_encoder(params, x, mask=None):
    B, S, D = x.shape
    H = params["h"]
    d_k = D // H
    scale = 1.0 / math.sqrt(d_k)
    bias_row = _mask_to_bias_row(mask, B, S)
    h = x
    for lp in params["layers"]:
        x2 = h.reshape(B * S, D).astype(COMPUTE_DTYPE)
        qkv = (jnp.dot(x2, lp["w_qkv"], preferred_element_type=jnp.float32)
               + lp["b_qkv"]).astype(COMPUTE_DTYPE)
        q, k, v = _split_heads_scaled(qkv, B, S, H, d_k, scale)
        s = jnp.einsum("bhqd,bhkd->bhqk", q, k,
                       preferred_element_type=jnp.float32)
        if bias_row is not None:
            s = s + bias_row[:, None, :, :]
        e = jnp.exp(s - jnp.max(s, axis=-1, keepdims=True))
        l = jnp.sum(e, axis=-1, keepdims=True)
        ctx = jnp.einsum("bhqk,bhkd->bhqd", e.astype(COMPUTE_DTYPE), v,
                         preferred_element_type=jnp.float32) / l
        ctx = ctx.transpose(0, 2, 1, 3).reshape(B * S, D).astype(COMPUTE_DTYPE)
        h = (jnp.dot(ctx, lp["w_o"], preferred_element_type=jnp.float32)
             + lp["b_o"]).astype(COMPUTE_DTYPE).reshape(B, S, D)
    xf = h.astype(jnp.float32)
    mean = xf.mean(-1, keepdims=True)
    xc = xf - mean
    var = jnp.sum(xc * xc, axis=-1, keepdims=True) / (D - 1)
    std = jnp.sqrt(var)
    return params["ln_gamma"] * xc / (std + 1e-6) + params["ln_beta"]


if __name__ == "__main__":
    B, S, d_model, n_heads, n_layers = 2, 8, 32, 4, 2
    assert d_model % n_heads == 0

    root = jax.random.PRNGKey(0)
    kp, kx = jax.random.split(root)
    params = init_encoder_params(kp, n_layers, n_heads, d_model)
    x = jax.random.normal(kx, (B, S, d_model), jnp.float32)

    # Key-padding mask: last two positions of batch 1 are padding.
    mask = jnp.ones((B, 1, S), jnp.int32).at[1, 0, S - 2:].set(0)

    # Masked path.
    out = jax.block_until_ready(encoder_forward(params, x, mask))
    ref = reference_encoder(params, x, mask)
    assert out.shape == (B, S, d_model)
    assert bool(jnp.all(jnp.isfinite(out)))
    max_err = float(jnp.max(jnp.abs(out - ref)))
    assert jnp.allclose(out, ref, atol=1e-2, rtol=1e-2), max_err

    # mask=None specialization (no bias operand in the attention kernel).
    out_nm = jax.block_until_ready(encoder_forward(params, x, None))
    ref_nm = reference_encoder(params, x, None)
    assert bool(jnp.all(jnp.isfinite(out_nm)))
    max_err_nm = float(jnp.max(jnp.abs(out_nm - ref_nm)))
    assert jnp.allclose(out_nm, ref_nm, atol=1e-2, rtol=1e-2), max_err_nm

    print("KERNEL_OK")
</pallas_src>

<mosaic_0001>
module attributes {stable_mosaic.version = 11 : i64} {
  func.func @_linear_resident_kernel(%arg0: i32, %arg1: memref<16x32xbf16, #tpu.memory_space<vmem>>, %arg2: memref<32x96xbf16, #tpu.memory_space<vmem>>, %arg3: memref<1x96xf32, #tpu.memory_space<vmem>>, %arg4: memref<16x96xbf16, #tpu.memory_space<vmem>>) attributes {dimension_semantics = [#tpu.dimension_semantics<parallel>], iteration_bounds = array<i64: 1>, scalar_prefetch = 0 : i64, scratch_operands = 0 : i64, tpu.core_type = #tpu.core_type<tc>, window_params = [{transform_indices = @transform_0, window_bounds = array<i64: 16, 32>}, {pipeline_mode = #tpu.pipeline_mode<synchronous>, transform_indices = @transform_1, window_bounds = array<i64: 32, 96>}, {pipeline_mode = #tpu.pipeline_mode<synchronous>, transform_indices = @transform_2, window_bounds = array<i64: 1, 96>}, {transform_indices = @transform_3, window_bounds = array<i64: 16, 96>}]} {
    %c0 = arith.constant 0 : index
    %c0_0 = arith.constant 0 : index
    %0 = vector.load %arg1[%c0, %c0_0] : memref<16x32xbf16, #tpu.memory_space<vmem>>, vector<16x32xbf16>
    %c0_1 = arith.constant 0 : index
    %c0_2 = arith.constant 0 : index
    %1 = vector.load %arg2[%c0_1, %c0_2] : memref<32x96xbf16, #tpu.memory_space<vmem>>, vector<32x96xbf16>
    %cst = arith.constant dense<0.000000e+00> : vector<16x96xf32>
    %2 = tpu.matmul %0, %1, %cst {dimension_numbers = #tpu.dot_dimension_numbers<[1], [0], [0], [1], [0, 0, 1, 1], [], []>} : vector<16x32xbf16>, vector<32x96xbf16>, vector<16x96xf32> -> vector<16x96xf32>
    %c0_3 = arith.constant 0 : index
    %c0_4 = arith.constant 0 : index
    %3 = vector.load %arg3[%c0_3, %c0_4] : memref<1x96xf32, #tpu.memory_space<vmem>>, vector<1x96xf32>
    %4 = vector.broadcast %3 : vector<1x96xf32> to vector<16x96xf32>
    %5 = arith.addf %2, %4 : vector<16x96xf32>
    %6 = arith.truncf %5 : vector<16x96xf32> to vector<16x96xbf16>
    %c0_5 = arith.constant 0 : index
    %c0_6 = arith.constant 0 : index
    %7 = vector.load %arg4[%c0_5, %c0_6] : memref<16x96xbf16, #tpu.memory_space<vmem>>, vector<16x96xbf16>
    tpu.vector_store %arg4[%c0_5, %c0_6], %6 {strides = array<i32>} : memref<16x96xbf16, #tpu.memory_space<vmem>>, vector<16x96xbf16>,
    return
  }
  func.func @transform_0(%arg0: i32) -> (i32, i32) {
    %c0_i32 = arith.constant 0 : i32
    %c0_i32_0 = arith.constant 0 : i32
    return %arg0, %c0_i32 : i32, i32
  }
  func.func @transform_1(%arg0: i32) -> (i32, i32) {
    %c0_i32 = arith.constant 0 : i32
    %c0_i32_0 = arith.constant 0 : i32
    %c0_i32_1 = arith.constant 0 : i32
    return %c0_i32, %c0_i32_0 : i32, i32
  }
  func.func @transform_2(%arg0: i32) -> (i32, i32) {
    %c0_i32 = arith.constant 0 : i32
    %c0_i32_0 = arith.constant 0 : i32
    %c0_i32_1 = arith.constant 0 : i32
    return %c0_i32, %c0_i32_0 : i32, i32
  }
  func.func @transform_3(%arg0: i32) -> (i32, i32) {
    %c0_i32 = arith.constant 0 : i32
    %c0_i32_0 = arith.constant 0 : i32
    return %arg0, %c0_i32 : i32, i32
  }
}

</mosaic_0001>

<bundles_post_ra>
// kernel: tpu_custom_call.1
= control target key start
LH: loop header
LB: loop body
LE: loop exit
PB: predicated region body
PF: predicated region fallthrough
CT: control target
= control target key end

     0   :  { %8 = vsyncpa [#allocation3], 0  ;;  %s264_s0 = inlined_call_operand.hbm [shape: bf16[16,32], index: 0, kind: input, shape index: {}]   ;;  %s265_s1 = inlined_call_operand.hbm [shape: bf16[32,96], index: 1, kind: input, shape index: {}]   ;;  %s266_s2 = inlined_call_operand.vmem [shape: f32[1,96], index: 2, kind: input, shape index: {}]   ;;  %s267_s3 = inlined_call_operand.hbm [shape: bf16[16,96], index: 3, kind: output, shape index: {}]  }
   0x1   :  { %9 = vsyncpa [#allocation6], 0 }
   0x2   :  { %10 = vsyncpa [#allocation4], 0  ;;  %s15_s14 = sshll.u32 %s264_s0, 4  ;;  %s218_s15 = smov [#allocation2]   ;;  %s16_s14 = int_to_ptr.hbm [resolvable:$true] %s15_s14 }
   0x3   :  { %s17_s16 = sshll.u32 %s218_s15, 4  ;;  %s28_s19 = sshll.u32 %s265_s1, 4  ;;  %s18_s16 = int_to_ptr.vmem [resolvable:$true] %s17_s16  ;;  %s29_s19 = int_to_ptr.hbm [resolvable:$true] %s28_s19 }
   0x4   :  { %s219_s20 = smov 64   ;;  %s220_s21 = smov 4  }
   0x5   :  { %23 = dma.hbm_to_vmem [thread:$0]  %s16_s14, 128, %s18_s16, [#allocation3], %s219_s20, %s219_s20, %s220_s21  }
   0x6   :  { %s221_s22 = smov [#allocation5]  }
   0x7   :  { %s30_s23 = sshll.u32 %s221_s22, 4  ;;  %s31_s23 = int_to_ptr.vmem [resolvable:$true] %s30_s23 }
   0x8   :  { %36 = dma.hbm_to_vmem [thread:$0]  %s29_s19, 256, %s31_s23, [#allocation6], %s219_s20, %s219_s20, %s220_s21  }
   0x9   :  { %212 = dma.done.wait [#allocation3], 128  }
   0xa   :  { %213 = vsyncadd [#allocation3], 4294967168 }
   0xb   :  { %214 = dma.done.wait [#allocation6], 256  }
   0xc   :  { %215 = vsyncadd [#allocation6], 4294967040  ;;  %v133_v0 = vld [vmem:[#allocation5 + $0x8] sm:$0xff]  ;;  %v132_v1 = vld [vmem:[#allocation5] sm:$0xff]  ;;  %vm75_vm0 = vcmask 261120   ;;  %vm95_vm1 = vcmask 781312  }
   0xd   :  { %85 = vmatpush.bf16.msra.mxu0 %v133_v0  ;;  %v131_v2 = vld [vmem:[#allocation2] sm:$0xff]  ;;  %s222_s24 = smov [#allocation7]   ;;  %s104_s28 = sshll.u32 %s267_s3, 4  ;;  %s105_s28 = int_to_ptr.hbm [resolvable:$true] %s104_s28 }
   0xe   :  { %v139_v3 = vld [vmem:[%s266_s2] ss:$0 sm:$0xff]  ;;  %s102_s25 = sshll.u32 %s222_s24, 4  ;;  %s103_s25 = int_to_ptr.vmem [resolvable:$true] %s102_s25 }
  0x11   :  { %86 = vmatpush.bf16.msra.mxu0 %v132_v1 }
  0x14   :  { %130 = vmatmul.msk.bf16.vlgmr.msra.gmra.mxu0 %vm75_vm0, %v131_v2 }
  0x91   :  { %v88_v4 = vpop.f32.mrf.mxu0 }
  0x92   :  { %v89_v5 = vadd.f32 %v139_v3, %v88_v4 }
  0x94   :  { %v93_v6 = vpack.c.bf16 %v89_v5, %v89_v5 }
  0x96   :  { %96 = vst.msk [vmem:[#allocation7] sm:$0xf] %vm95_vm1, %v93_v6 }
  0x99   :  { %v90_v7 = vpop.f32.mrf.mxu0 }
  0x9a   :  { %v91_v8 = vadd.f32 %v139_v3, %v90_v7 }
  0x9c   :  { %v94_v9 = vpack.c.bf16 %v91_v8, %v91_v8 }
  0x9e   :  { %97 = vst.msk [vmem:[#allocation7 + $0x4] sm:$0xf] %vm95_vm1, %v94_v9 }
  0x9f   :  { %110 = dma.vmem_to_hbm [thread:$0]  %s103_s25, 128, %s105_s28, [#allocation4], %s219_s20, %s219_s20, %s220_s21  }
  0xa0   :  { %216 = dma.done.wait [#allocation4], 128  }
  0xa1   :  { %217 = vsyncadd [#allocation4], 4294967168 }
  0xa2   :  { %115 = vsyncpa [#allocation3], 1 }
  0xa3   :  { %116 = vsyncpa [#allocation6], 1 }
  0xa4   :  { %117 = vsyncpa [#allocation4], 1 }

</bundles_post_ra>
